<compile_context>
chip_gen: v7x
topology: tpu7x:2x2x1
jax: 0.10.0
libtpu: 0.0.40
codegen_flags: <defaults>
</compile_context>

<pallas_src>
import functools

import jax
import jax.numpy as jnp
from jax.experimental import pallas as pl
from jax.experimental.pallas import tpu as pltpu


# ---------------------------------------------------------------------------
# Fused kernel body
# ---------------------------------------------------------------------------
def make_fused_resblock_kernel(bsub, H, W, cin, cout, groups, eps=1e-5):
    M = bsub * H                                   # folded-batch MXU row dimension
    inv_n1 = float(groups) / float(H * W * cin)    # 1 / (#elements per group), block1
    inv_n2 = float(groups) / float(H * W * cout)   # 1 / (#elements per group), block2

    def gn_swish(v3, gmask, gamma, beta, inv_n):
        """GroupNorm + Swish on a (bsub, H, W*C) tile; stats are per-image, exact f32.

        Single-pass: sum(x) and sum(x*x) are reduced together so the two XLU
        reduction chains are independent instead of serializing on the mean.
        """
        lane_sum = jnp.sum(v3, axis=1, keepdims=True)                     # (bsub,1,WC)
        lane_sq = jnp.sum(v3 * v3, axis=1, keepdims=True)                 # (bsub,1,WC)
        gm = gmask[None]                                                  # (1,G,WC)
        gsum = jnp.sum(gm * lane_sum, axis=2, keepdims=True)              # (bsub,G,1)
        gsq = jnp.sum(gm * lane_sq, axis=2, keepdims=True)                # (bsub,G,1)
        mean = jnp.sum(gm * (gsum * inv_n), axis=1, keepdims=True)        # (bsub,1,WC)
        ex2 = jnp.sum(gm * (gsq * inv_n), axis=1, keepdims=True)          # (bsub,1,WC)
        var = jnp.maximum(ex2 - mean * mean, 0.0)
        y = (v3 - mean) * jax.lax.rsqrt(var + eps) * gamma + beta
        return y * jax.nn.sigmoid(y)                                      # Swish

    def kernel(x_ref, gm1_ref, g1_ref, b1_ref, m1_ref, cb1_ref,
               gm2_ref, g2_ref, b2_ref, m2_ref, cb2_ref,
               rm_ref, rb_ref, o_ref):
        x3 = x_ref[...].astype(jnp.float32)                               # (bsub,H,WCi)

        # Per-image boundary masks for the H-direction shifts (padding=1 semantics):
        # rows shifted in from the previous/next image must read zeros.
        row = jax.lax.broadcasted_iota(jnp.int32, (M, 1), 0) % H
        has_up = row != 0          # row h-1 exists within the image
        has_dn = row != (H - 1)    # row h+1 exists within the image

        def conv3x3(v3, m_ref, bias):
            # 3x3 conv as 3 row-shifted (M, W*Cin) @ (W*Cin, W*Cout) matmuls against
            # banded row matrices.  Row shifts are XLU rolls + boundary zeroing (no MXU
            # selection matrices).  bf16 operands, f32 accumulation on the MXU.
            wc = v3.shape[-1]
            v = v3.reshape(M, wc)                                         # layout no-op
            up = jnp.where(has_up, pltpu.roll(v, shift=1, axis=0), 0.0)   # v[r-1]
            dn = jnp.where(has_dn, pltpu.roll(v, shift=M - 1, axis=0), 0.0)  # v[r+1]
            acc = jnp.dot(up.astype(jnp.bfloat16), m_ref[0],
                          preferred_element_type=jnp.float32)
            acc = acc + jnp.dot(v.astype(jnp.bfloat16), m_ref[1],
                                preferred_element_type=jnp.float32)
            acc = acc + jnp.dot(dn.astype(jnp.bfloat16), m_ref[2],
                                preferred_element_type=jnp.float32)
            acc = acc + bias
            return acc.reshape(bsub, H, -1)

        # block1: GN -> Swish -> Conv3x3
        h = gn_swish(x3, gm1_ref[...], g1_ref[...], b1_ref[...], inv_n1)
        h = conv3x3(h, m1_ref, cb1_ref[...])
        # block2: GN -> Swish -> (Dropout p=0 => Identity) -> Conv3x3
        h = gn_swish(h, gm2_ref[...], g2_ref[...], b2_ref[...], inv_n2)
        h = conv3x3(h, m2_ref, cb2_ref[...])

        # residual 1x1 conv + add (block-diagonal matmul), fused into the same kernel.
        xs = x3.reshape(M, -1).astype(jnp.bfloat16)
        res = jnp.dot(xs, rm_ref[...], preferred_element_type=jnp.float32) + rb_ref[...]
        o_ref[...] = (h + res.reshape(bsub, H, -1)).astype(o_ref.dtype)

    return kernel


# ---------------------------------------------------------------------------
# Host-side parameter packing (done ONCE per weight update, not per forward)
# ---------------------------------------------------------------------------
def conv3x3_to_row_mats(w_hwio, W):
    """(3,3,Cin,Cout) HWIO weights -> (3, W*Cin, W*Cout) banded row matrices.

    mats[dy, wp*Cin+ci, wo*Cout+co] = w[dy, wp-wo+1, ci, co] if the tap is in range,
    so  out_row = rows_{h+dy-1} @ mats[dy]  implements padding=1 in the W direction.
    """
    kh, kw, cin, cout = w_hwio.shape
    wp = jnp.arange(W)[:, None]
    wo = jnp.arange(W)[None, :]
    dx = wp - wo + 1
    valid = (dx >= 0) & (dx < kw)
    dxc = jnp.clip(dx, 0, kw - 1)
    g = w_hwio[:, dxc, :, :]                                  # (3, W, W, cin, cout)
    g = jnp.where(valid[None, :, :, None, None], g, 0.0)
    return jnp.transpose(g, (0, 1, 3, 2, 4)).reshape(kh, W * cin, W * cout)


def group_masks(C, W, groups):
    """(G, W*C) 0/1 mask: mask[g, w*C+c] = 1 iff channel c belongs to group g."""
    grp = (jnp.arange(W * C) % C) // (C // groups)
    return (grp[None, :] == jnp.arange(groups)[:, None]).astype(jnp.float32)


def tile_lanes(v, W):
    """Per-channel vector (C,) -> lane layout (1, W*C)."""
    return jnp.tile(v, W).reshape(1, W * v.shape[0])


def pack_params(params, W, groups, mxu_dtype=jnp.bfloat16):
    """Pre-pack all weights into kernel layout. Weight matrices go to bf16 for the MXU;
    GN affine params, biases and masks stay f32 (VPU math)."""
    cin, cout = params["res_w"].shape
    return {
        "gm1": group_masks(cin, W, groups),
        "gm2": group_masks(cout, W, groups),
        "g1": tile_lanes(params["gn1_gamma"], W),
        "b1": tile_lanes(params["gn1_beta"], W),
        "g2": tile_lanes(params["gn2_gamma"], W),
        "b2": tile_lanes(params["gn2_beta"], W),
        "m1": conv3x3_to_row_mats(params["conv1_w"], W).astype(mxu_dtype),
        "m2": conv3x3_to_row_mats(params["conv2_w"], W).astype(mxu_dtype),
        "cb1": tile_lanes(params["conv1_b"], W),
        "cb2": tile_lanes(params["conv2_b"], W),
        # 1x1 residual conv as a block-diagonal (W*Cin, W*Cout) matmul.
        "rm": jnp.kron(jnp.eye(W, dtype=params["res_w"].dtype),
                       params["res_w"]).astype(mxu_dtype),
        "rb": tile_lanes(params["res_b"], W),
    }


def choose_images_per_step(B, H, target_rows=128):
    """Fold images into the MXU M dimension (target M>=128 rows; >=256 on v6e/v7x)."""
    ideal = max(1, target_rows // H)
    bsub = min(B, ideal)
    while B % bsub:
        bsub -= 1
    return bsub


# ---------------------------------------------------------------------------
# ResnetBlock forward (single fused pallas_call)
# ---------------------------------------------------------------------------
def resnet_block_forward(x_nchw, packed, groups, eps=1e-5):
    B, Cin, H, W = x_nchw.shape
    WCi, WCo = packed["m1"].shape[1], packed["m1"].shape[2]
    Cout = WCo // W

    # NCHW -> NHWC -> lane-packed (B, H, W*Cin).
    x = jnp.transpose(x_nchw, (0, 2, 3, 1)).reshape(B, H, WCi)

    bsub = choose_images_per_step(B, H)
    steps = B // bsub
    M = bsub * H

    # Advisory cost estimate so XLA schedules neighbors around the custom call.
    flops = steps * (3 * 2 * M * WCi * WCo + 3 * 2 * M * WCo * WCo + 2 * M * WCi * WCo)
    transcendentals = steps * (M * (WCi + WCo) + bsub * (WCi + WCo))
    bytes_accessed = int(
        x.size * x.dtype.itemsize + B * H * WCo * x.dtype.itemsize
        + sum(v.size * v.dtype.itemsize for v in packed.values()))

    full = lambda *shape: pl.BlockSpec(shape, lambda b: (0,) * len(shape))

    out = pl.pallas_call(
        make_fused_resblock_kernel(bsub, H, W, Cin, Cout, groups, eps),
        out_shape=jax.ShapeDtypeStruct((B, H, WCo), x_nchw.dtype),
        grid=(steps,),
        in_specs=[
            pl.BlockSpec((bsub, H, WCi), lambda b: (b, 0, 0)),   # x (bsub images/step)
            full(groups, WCi),                                   # gm1
            full(1, WCi),                                        # gamma1
            full(1, WCi),                                        # beta1
            full(3, WCi, WCo),                                   # conv1 row mats (bf16)
            full(1, WCo),                                        # conv1 bias
            full(groups, WCo),                                   # gm2
            full(1, WCo),                                        # gamma2
            full(1, WCo),                                        # beta2
            full(3, WCo, WCo),                                   # conv2 row mats (bf16)
            full(1, WCo),                                        # conv2 bias
            full(WCi, WCo),                                      # residual 1x1 (bf16)
            full(1, WCo),                                        # residual bias
        ],
        out_specs=pl.BlockSpec((bsub, H, WCo), lambda b: (b, 0, 0)),  # lane-dense store
        compiler_params=pltpu.CompilerParams(dimension_semantics=("parallel",)),
        cost_estimate=pl.CostEstimate(flops=flops, transcendentals=transcendentals,
                                      bytes_accessed=bytes_accessed),
    )(x, packed["gm1"], packed["g1"], packed["b1"], packed["m1"], packed["cb1"],
      packed["gm2"], packed["g2"], packed["b2"], packed["m2"], packed["cb2"],
      packed["rm"], packed["rb"])

    return jnp.transpose(out.reshape(B, H, W, Cout), (0, 3, 1, 2))    # -> NCHW


# ---------------------------------------------------------------------------
# Pure-JAX reference for correctness checking
# ---------------------------------------------------------------------------
def ref_forward(x_nchw, params, groups, eps=1e-5):
    x = jnp.transpose(x_nchw, (0, 2, 3, 1))

    def gn(v, gamma, beta):
        B, H, W, C = v.shape
        vr = v.reshape(B, H * W, groups, C // groups)
        mean = vr.mean(axis=(1, 3), keepdims=True)
        var = ((vr - mean) ** 2).mean(axis=(1, 3), keepdims=True)
        vn = ((vr - mean) * jax.lax.rsqrt(var + eps)).reshape(B, H, W, C)
        return vn * gamma + beta

    def swish(v):
        return v * jax.nn.sigmoid(v)

    def conv(v, w, b):
        return jax.lax.conv_general_dilated(
            v, w, (1, 1), "SAME",
            dimension_numbers=("NHWC", "HWIO", "NHWC")) + b

    h = conv(swish(gn(x, params["gn1_gamma"], params["gn1_beta"])),
             params["conv1_w"], params["conv1_b"])
    h = conv(swish(gn(h, params["gn2_gamma"], params["gn2_beta"])),
             params["conv2_w"], params["conv2_b"])
    cin, cout = params["res_w"].shape
    res = conv(x, params["res_w"].reshape(1, 1, cin, cout), params["res_b"])
    return jnp.transpose(h + res, (0, 3, 1, 2))


# ---------------------------------------------------------------------------
# Main
# ---------------------------------------------------------------------------
if __name__ == "__main__":
    # Shapes consistent with ResnetBlock(dim=4, dim_out=8, norm_groups=2)
    B, CIN, COUT, H, W = 2, 4, 8, 16, 16
    GROUPS = 2

    key = jax.random.PRNGKey(0)
    kx, k1, k2, k3, k4, k5, k6, k7 = jax.random.split(key, 8)

    x = jax.random.normal(kx, (B, CIN, H, W), jnp.float32)

    params = {
        "gn1_gamma": 1.0 + 0.1 * jax.random.normal(k1, (CIN,), jnp.float32),
        "gn1_beta": 0.1 * jax.random.normal(k2, (CIN,), jnp.float32),
        "gn2_gamma": 1.0 + 0.1 * jax.random.normal(k3, (COUT,), jnp.float32),
        "gn2_beta": 0.1 * jax.random.normal(k4, (COUT,), jnp.float32),
        # Conv weights in HWIO layout (equivalent to PyTorch OIHW up to transpose)
        "conv1_w": 0.1 * jax.random.normal(k5, (3, 3, CIN, COUT), jnp.float32),
        "conv1_b": 0.01 * jnp.arange(COUT, dtype=jnp.float32),
        "conv2_w": 0.1 * jax.random.normal(k6, (3, 3, COUT, COUT), jnp.float32),
        "conv2_b": 0.02 * jnp.arange(COUT, dtype=jnp.float32),
        # 1x1 residual conv (dim != dim_out)
        "res_w": 0.1 * jax.random.normal(k7, (CIN, COUT), jnp.float32),
        "res_b": 0.03 * jnp.arange(COUT, dtype=jnp.float32),
    }

    # Pack weights once (per weight update in a real model), then run the fused kernel.
    packed = jax.tree_util.tree_map(jax.block_until_ready,
                                    pack_params(params, W, GROUPS))
    fwd = jax.jit(functools.partial(resnet_block_forward, groups=GROUPS))

    out = jax.block_until_ready(fwd(x, packed))
    expected = jax.block_until_ready(ref_forward(x, params, GROUPS))

    assert out.shape == (B, COUT, H, W)
    # Tolerance accounts for bf16 MXU operands (f32 accumulation) vs the f32 XLA
    # reference conv; GroupNorm statistics themselves are exact f32.
    assert jnp.allclose(out, expected, atol=3e-2, rtol=3e-2), "mismatch vs reference"

    print("KERNEL_OK")
</pallas_src>

<mosaic_0001>
module attributes {stable_mosaic.version = 11 : i64} {
  func.func @kernel(%arg0: i32, %arg1: memref<2x16x64xf32, #tpu.memory_space<vmem>>, %arg2: memref<2x64xf32, #tpu.memory_space<vmem>>, %arg3: memref<1x64xf32, #tpu.memory_space<vmem>>, %arg4: memref<1x64xf32, #tpu.memory_space<vmem>>, %arg5: memref<3x64x128xbf16, #tpu.memory_space<vmem>>, %arg6: memref<1x128xf32, #tpu.memory_space<vmem>>, %arg7: memref<2x128xf32, #tpu.memory_space<vmem>>, %arg8: memref<1x128xf32, #tpu.memory_space<vmem>>, %arg9: memref<1x128xf32, #tpu.memory_space<vmem>>, %arg10: memref<3x128x128xbf16, #tpu.memory_space<vmem>>, %arg11: memref<1x128xf32, #tpu.memory_space<vmem>>, %arg12: memref<64x128xbf16, #tpu.memory_space<vmem>>, %arg13: memref<1x128xf32, #tpu.memory_space<vmem>>, %arg14: memref<2x16x128xf32, #tpu.memory_space<vmem>>) attributes {dimension_semantics = [#tpu.dimension_semantics<parallel>], iteration_bounds = array<i64: 1>, scalar_prefetch = 0 : i64, scratch_operands = 0 : i64, tpu.core_type = #tpu.core_type<tc>, window_params = [{transform_indices = @transform_0, window_bounds = array<i64: 2, 16, 64>}, {pipeline_mode = #tpu.pipeline_mode<synchronous>, transform_indices = @transform_1, window_bounds = array<i64: 2, 64>}, {pipeline_mode = #tpu.pipeline_mode<synchronous>, transform_indices = @transform_2, window_bounds = array<i64: 1, 64>}, {pipeline_mode = #tpu.pipeline_mode<synchronous>, transform_indices = @transform_3, window_bounds = array<i64: 1, 64>}, {pipeline_mode = #tpu.pipeline_mode<synchronous>, transform_indices = @transform_4, window_bounds = array<i64: 3, 64, 128>}, {pipeline_mode = #tpu.pipeline_mode<synchronous>, transform_indices = @transform_5, window_bounds = array<i64: 1, 128>}, {pipeline_mode = #tpu.pipeline_mode<synchronous>, transform_indices = @transform_6, window_bounds = array<i64: 2, 128>}, {pipeline_mode = #tpu.pipeline_mode<synchronous>, transform_indices = @transform_7, window_bounds = array<i64: 1, 128>}, {pipeline_mode = #tpu.pipeline_mode<synchronous>, transform_indices = @transform_8, window_bounds = array<i64: 1, 128>}, {pipeline_mode = #tpu.pipeline_mode<synchronous>, transform_indices = @transform_9, window_bounds = array<i64: 3, 128, 128>}, {pipeline_mode = #tpu.pipeline_mode<synchronous>, transform_indices = @transform_10, window_bounds = array<i64: 1, 128>}, {pipeline_mode = #tpu.pipeline_mode<synchronous>, transform_indices = @transform_11, window_bounds = array<i64: 64, 128>}, {pipeline_mode = #tpu.pipeline_mode<synchronous>, transform_indices = @transform_12, window_bounds = array<i64: 1, 128>}, {transform_indices = @transform_13, window_bounds = array<i64: 2, 16, 128>}]} {
    %c0 = arith.constant 0 : index
    %c0_0 = arith.constant 0 : index
    %c0_1 = arith.constant 0 : index
    %0 = vector.load %arg1[%c0, %c0_0, %c0_1] : memref<2x16x64xf32, #tpu.memory_space<vmem>>, vector<2x16x64xf32>
    %1 = tpu.iota {dimensions = array<i32: 0>} : vector<32x1xi32>
    %c16_i32 = arith.constant 16 : i32
    %c0_i32 = arith.constant 0 : i32
    %2 = arith.cmpi eq, %c16_i32, %c0_i32 : i32
    %c1_i32 = arith.constant 1 : i32
    %3 = arith.select %2, %c1_i32, %c16_i32 : i32
    %4 = vector.broadcast %3 : i32 to vector<32x1xi32>
    %5 = arith.remsi %1, %4 : vector<32x1xi32>
    %c0_i32_2 = arith.constant 0 : i32
    %6 = vector.broadcast %c0_i32_2 : i32 to vector<32x1xi32>
    %7 = arith.cmpi ne, %5, %6 : vector<32x1xi32>
    %c0_i32_3 = arith.constant 0 : i32
    %8 = vector.broadcast %c0_i32_3 : i32 to vector<32x1xi32>
    %9 = arith.cmpi slt, %5, %8 : vector<32x1xi32>
    %c0_i32_4 = arith.constant 0 : i32
    %10 = arith.cmpi slt, %3, %c0_i32_4 : i32
    %11 = vector.broadcast %10 : i1 to vector<32x1xi1>
    %12 = vector.broadcast %11 : vector<32x1xi1> to vector<32x1xi1>
    %13 = arith.xori %9, %12 : vector<32x1xi1>
    %14 = arith.andi %13, %7 : vector<32x1xi1>
    %15 = vector.broadcast %3 : i32 to vector<32x1xi32>
    %16 = arith.addi %5, %15 : vector<32x1xi32>
    %17 = arith.select %14, %16, %5 : vector<32x1xi1>, vector<32x1xi32>
    %c0_i32_5 = arith.constant 0 : i32
    %18 = vector.broadcast %c0_i32_5 : i32 to vector<32x1xi32>
    %19 = arith.cmpi ne, %17, %18 : vector<32x1xi32>
    %c15_i32 = arith.constant 15 : i32
    %20 = vector.broadcast %c15_i32 : i32 to vector<32x1xi32>
    %21 = arith.cmpi ne, %17, %20 : vector<32x1xi32>
    %c0_6 = arith.constant 0 : index
    %c0_7 = arith.constant 0 : index
    %22 = vector.load %arg2[%c0_6, %c0_7] : memref<2x64xf32, #tpu.memory_space<vmem>>, vector<2x64xf32>
    %c0_8 = arith.constant 0 : index
    %c0_9 = arith.constant 0 : index
    %23 = vector.load %arg3[%c0_8, %c0_9] : memref<1x64xf32, #tpu.memory_space<vmem>>, vector<1x64xf32>
    %c0_10 = arith.constant 0 : index
    %c0_11 = arith.constant 0 : index
    %24 = vector.load %arg4[%c0_10, %c0_11] : memref<1x64xf32, #tpu.memory_space<vmem>>, vector<1x64xf32>
    %cst = arith.constant dense<0.000000e+00> : vector<2x64xf32>
    %25 = vector.multi_reduction <add>, %0, %cst [1] : vector<2x16x64xf32> to vector<2x64xf32>
    %26 = vector.shape_cast %25 : vector<2x64xf32> to vector<2x1x64xf32>
    %27 = arith.mulf %0, %0 : vector<2x16x64xf32>
    %cst_12 = arith.constant dense<0.000000e+00> : vector<2x64xf32>
    %28 = vector.multi_reduction <add>, %27, %cst_12 [1] : vector<2x16x64xf32> to vector<2x64xf32>
    %29 = vector.shape_cast %28 : vector<2x64xf32> to vector<2x1x64xf32>
    %30 = vector.shape_cast %22 : vector<2x64xf32> to vector<1x2x64xf32>
    %31 = vector.broadcast %30 : vector<1x2x64xf32> to vector<2x2x64xf32>
    %32 = vector.broadcast %26 : vector<2x1x64xf32> to vector<2x2x64xf32>
    %33 = arith.mulf %31, %32 : vector<2x2x64xf32>
    %cst_13 = arith.constant dense<0.000000e+00> : vector<2x2xf32>
    %34 = vector.multi_reduction <add>, %33, %cst_13 [2] : vector<2x2x64xf32> to vector<2x2xf32>
    %35 = vector.shape_cast %34 : vector<2x2xf32> to vector<2x2x1xf32>
    %36 = vector.broadcast %30 : vector<1x2x64xf32> to vector<2x2x64xf32>
    %37 = vector.broadcast %29 : vector<2x1x64xf32> to vector<2x2x64xf32>
    %38 = arith.mulf %36, %37 : vector<2x2x64xf32>
    %cst_14 = arith.constant dense<0.000000e+00> : vector<2x2xf32>
    %39 = vector.multi_reduction <add>, %38, %cst_14 [2] : vector<2x2x64xf32> to vector<2x2xf32>
    %40 = vector.shape_cast %39 : vector<2x2xf32> to vector<2x2x1xf32>
    %cst_15 = arith.constant 0.001953125 : f32
    %41 = vector.broadcast %cst_15 : f32 to vector<2x2x1xf32>
    %42 = arith.mulf %35, %41 : vector<2x2x1xf32>
    %43 = vector.broadcast %30 : vector<1x2x64xf32> to vector<2x2x64xf32>
    %44 = vector.broadcast %42 : vector<2x2x1xf32> to vector<2x2x64xf32>
    %45 = arith.mulf %43, %44 : vector<2x2x64xf32>
    %cst_16 = arith.constant dense<0.000000e+00> : vector<2x64xf32>
    %46 = vector.multi_reduction <add>, %45, %cst_16 [1] : vector<2x2x64xf32> to vector<2x64xf32>
    %47 = vector.shape_cast %46 : vector<2x64xf32> to vector<2x1x64xf32>
    %cst_17 = arith.constant 0.001953125 : f32
    %48 = vector.broadcast %cst_17 : f32 to vector<2x2x1xf32>
    %49 = arith.mulf %40, %48 : vector<2x2x1xf32>
    %50 = vector.broadcast %30 : vector<1x2x64xf32> to vector<2x2x64xf32>
    %51 = vector.broadcast %49 : vector<2x2x1xf32> to vector<2x2x64xf32>
    %52 = arith.mulf %50, %51 : vector<2x2x64xf32>
    %cst_18 = arith.constant dense<0.000000e+00> : vector<2x64xf32>
    %53 = vector.multi_reduction <add>, %52, %cst_18 [1] : vector<2x2x64xf32> to vector<2x64xf32>
    %54 = vector.shape_cast %53 : vector<2x64xf32> to vector<2x1x64xf32>
    %55 = arith.mulf %47, %47 : vector<2x1x64xf32>
    %56 = arith.subf %54, %55 : vector<2x1x64xf32>
    %cst_19 = arith.constant 0.000000e+00 : f32
    %57 = vector.broadcast %cst_19 : f32 to vector<2x1x64xf32>
    %58 = arith.maximumf %56, %57 : vector<2x1x64xf32>
    %59 = vector.broadcast %47 : vector<2x1x64xf32> to vector<2x16x64xf32>
    %60 = arith.subf %0, %59 : vector<2x16x64xf32>
    %cst_20 = arith.constant 9.99999974E-6 : f32
    %61 = vector.broadcast %cst_20 : f32 to vector<2x1x64xf32>
    %62 = arith.addf %58, %61 : vector<2x1x64xf32>
    %63 = math.rsqrt %62 : vector<2x1x64xf32>
    %64 = vector.broadcast %63 : vector<2x1x64xf32> to vector<2x16x64xf32>
    %65 = arith.mulf %60, %64 : vector<2x16x64xf32>
    %66 = vector.shape_cast %23 : vector<1x64xf32> to vector<1x1x64xf32>
    %67 = vector.broadcast %66 : vector<1x1x64xf32> to vector<2x16x64xf32>
    %68 = arith.mulf %65, %67 : vector<2x16x64xf32>
    %69 = vector.shape_cast %24 : vector<1x64xf32> to vector<1x1x64xf32>
    %70 = vector.broadcast %69 : vector<1x1x64xf32> to vector<2x16x64xf32>
    %71 = arith.addf %68, %70 : vector<2x16x64xf32>
    %72 = arith.negf %71 : vector<2x16x64xf32>
    %73 = math.exp %72 : vector<2x16x64xf32>
    %cst_21 = arith.constant 1.000000e+00 : f32
    %74 = vector.broadcast %cst_21 : f32 to vector<2x16x64xf32>
    %75 = arith.addf %74, %73 : vector<2x16x64xf32>
    %76 = arith.divf %74, %75 : vector<2x16x64xf32>
    %77 = arith.mulf %71, %76 : vector<2x16x64xf32>
    %c0_22 = arith.constant 0 : index
    %c0_23 = arith.constant 0 : index
    %78 = vector.load %arg6[%c0_22, %c0_23] : memref<1x128xf32, #tpu.memory_space<vmem>>, vector<1x128xf32>
    %79 = vector.shape_cast %77 : vector<2x16x64xf32> to vector<32x64xf32>
    %c1_i32_24 = arith.constant 1 : i32
    %80 = tpu.dynamic_rotate %79 by %c1_i32_24 dim 0 : vector<32x64xf32>, i32 -> vector<32x64xf32>
    %cst_25 = arith.constant 0.000000e+00 : f32
    %81 = vector.shape_cast %19 : vector<32x1xi1> to vector<32x1xi1>
    %82 = vector.broadcast %81 : vector<32x1xi1> to vector<32x64xi1>
    %83 = vector.broadcast %cst_25 : f32 to vector<32x64xf32>
    %84 = arith.select %82, %80, %83 : vector<32x64xi1>, vector<32x64xf32>
    %c31_i32 = arith.constant 31 : i32
    %85 = tpu.dynamic_rotate %79 by %c31_i32 dim 0 : vector<32x64xf32>, i32 -> vector<32x64xf32>
    %cst_26 = arith.constant 0.000000e+00 : f32
    %86 = vector.shape_cast %21 : vector<32x1xi1> to vector<32x1xi1>
    %87 = vector.broadcast %86 : vector<32x1xi1> to vector<32x64xi1>
    %88 = vector.broadcast %cst_26 : f32 to vector<32x64xf32>
    %89 = arith.select %87, %85, %88 : vector<32x64xi1>, vector<32x64xf32>
    %90 = arith.truncf %84 : vector<32x64xf32> to vector<32x64xbf16>
    %c0_27 = arith.constant 0 : index
    %c0_28 = arith.constant 0 : index
    %c0_29 = arith.constant 0 : index
    %91 = vector.load %arg5[%c0_27, %c0_28, %c0_29] : memref<3x64x128xbf16, #tpu.memory_space<vmem>>, vector<1x64x128xbf16>
    %92 = vector.shape_cast %91 : vector<1x64x128xbf16> to vector<64x128xbf16>
    %cst_30 = arith.constant dense<0.000000e+00> : vector<32x128xf32>
    %93 = tpu.matmul %90, %92, %cst_30 {dimension_numbers = #tpu.dot_dimension_numbers<[1], [0], [0], [1], [0, 0, 1, 1], [], []>} : vector<32x64xbf16>, vector<64x128xbf16>, vector<32x128xf32> -> vector<32x128xf32>
    %94 = arith.truncf %79 : vector<32x64xf32> to vector<32x64xbf16>
    %c1 = arith.constant 1 : index
    %c0_31 = arith.constant 0 : index
    %c0_32 = arith.constant 0 : index
    %95 = vector.load %arg5[%c1, %c0_31, %c0_32] : memref<3x64x128xbf16, #tpu.memory_space<vmem>>, vector<1x64x128xbf16>
    %96 = vector.shape_cast %95 : vector<1x64x128xbf16> to vector<64x128xbf16>
    %cst_33 = arith.constant dense<0.000000e+00> : vector<32x128xf32>
    %97 = tpu.matmul %94, %96, %cst_33 {dimension_numbers = #tpu.dot_dimension_numbers<[1], [0], [0], [1], [0, 0, 1, 1], [], []>} : vector<32x64xbf16>, vector<64x128xbf16>, vector<32x128xf32> -> vector<32x128xf32>
    %98 = arith.addf %93, %97 : vector<32x128xf32>
    %99 = arith.truncf %89 : vector<32x64xf32> to vector<32x64xbf16>
    %c2 = arith.constant 2 : index
    %c0_34 = arith.constant 0 : index
    %c0_35 = arith.constant 0 : index
    %100 = vector.load %arg5[%c2, %c0_34, %c0_35] : memref<3x64x128xbf16, #tpu.memory_space<vmem>>, vector<1x64x128xbf16>
    %101 = vector.shape_cast %100 : vector<1x64x128xbf16> to vector<64x128xbf16>
    %cst_36 = arith.constant dense<0.000000e+00> : vector<32x128xf32>
    %102 = tpu.matmul %99, %101, %cst_36 {dimension_numbers = #tpu.dot_dimension_numbers<[1], [0], [0], [1], [0, 0, 1, 1], [], []>} : vector<32x64xbf16>, vector<64x128xbf16>, vector<32x128xf32> -> vector<32x128xf32>
    %103 = arith.addf %98, %102 : vector<32x128xf32>
    %104 = vector.broadcast %78 : vector<1x128xf32> to vector<32x128xf32>
    %105 = arith.addf %103, %104 : vector<32x128xf32>
    %106 = vector.shape_cast %105 : vector<32x128xf32> to vector<2x16x128xf32>
    %c0_37 = arith.constant 0 : index
    %c0_38 = arith.constant 0 : index
    %107 = vector.load %arg7[%c0_37, %c0_38] : memref<2x128xf32, #tpu.memory_space<vmem>>, vector<2x128xf32>
    %c0_39 = arith.constant 0 : index
    %c0_40 = arith.constant 0 : index
    %108 = vector.load %arg8[%c0_39, %c0_40] : memref<1x128xf32, #tpu.memory_space<vmem>>, vector<1x128xf32>
    %c0_41 = arith.constant 0 : index
    %c0_42 = arith.constant 0 : index
    %109 = vector.load %arg9[%c0_41, %c0_42] : memref<1x128xf32, #tpu.memory_space<vmem>>, vector<1x128xf32>
    %cst_43 = arith.constant dense<0.000000e+00> : vector<2x128xf32>
    %110 = vector.multi_reduction <add>, %106, %cst_43 [1] : vector<2x16x128xf32> to vector<2x128xf32>
    %111 = vector.shape_cast %110 : vector<2x128xf32> to vector<2x1x128xf32>
    %112 = arith.mulf %106, %106 : vector<2x16x128xf32>
    %cst_44 = arith.constant dense<0.000000e+00> : vector<2x128xf32>
    %113 = vector.multi_reduction <add>, %112, %cst_44 [1] : vector<2x16x128xf32> to vector<2x128xf32>
    %114 = vector.shape_cast %113 : vector<2x128xf32> to vector<2x1x128xf32>
    %115 = vector.shape_cast %107 : vector<2x128xf32> to vector<1x2x128xf32>
    %116 = vector.broadcast %115 : vector<1x2x128xf32> to vector<2x2x128xf32>
    %117 = vector.broadcast %111 : vector<2x1x128xf32> to vector<2x2x128xf32>
    %118 = arith.mulf %116, %117 : vector<2x2x128xf32>
    %cst_45 = arith.constant dense<0.000000e+00> : vector<2x2xf32>
    %119 = vector.multi_reduction <add>, %118, %cst_45 [2] : vector<2x2x128xf32> to vector<2x2xf32>
    %120 = vector.shape_cast %119 : vector<2x2xf32> to vector<2x2x1xf32>
    %121 = vector.broadcast %115 : vector<1x2x128xf32> to vector<2x2x128xf32>
    %122 = vector.broadcast %114 : vector<2x1x128xf32> to vector<2x2x128xf32>
    %123 = arith.mulf %121, %122 : vector<2x2x128xf32>
    %cst_46 = arith.constant dense<0.000000e+00> : vector<2x2xf32>
    %124 = vector.multi_reduction <add>, %123, %cst_46 [2] : vector<2x2x128xf32> to vector<2x2xf32>
    %125 = vector.shape_cast %124 : vector<2x2xf32> to vector<2x2x1xf32>
    %cst_47 = arith.constant 9.765625E-4 : f32
    %126 = vector.broadcast %cst_47 : f32 to vector<2x2x1xf32>
    %127 = arith.mulf %120, %126 : vector<2x2x1xf32>
    %128 = vector.broadcast %115 : vector<1x2x128xf32> to vector<2x2x128xf32>
    %129 = vector.broadcast %127 : vector<2x2x1xf32> to vector<2x2x128xf32>
    %130 = arith.mulf %128, %129 : vector<2x2x128xf32>
    %cst_48 = arith.constant dense<0.000000e+00> : vector<2x128xf32>
    %131 = vector.multi_reduction <add>, %130, %cst_48 [1] : vector<2x2x128xf32> to vector<2x128xf32>
    %132 = vector.shape_cast %131 : vector<2x128xf32> to vector<2x1x128xf32>
    %cst_49 = arith.constant 9.765625E-4 : f32
    %133 = vector.broadcast %cst_49 : f32 to vector<2x2x1xf32>
    %134 = arith.mulf %125, %133 : vector<2x2x1xf32>
    %135 = vector.broadcast %115 : vector<1x2x128xf32> to vector<2x2x128xf32>
    %136 = vector.broadcast %134 : vector<2x2x1xf32> to vector<2x2x128xf32>
    %137 = arith.mulf %135, %136 : vector<2x2x128xf32>
    %cst_50 = arith.constant dense<0.000000e+00> : vector<2x128xf32>
    %138 = vector.multi_reduction <add>, %137, %cst_50 [1] : vector<2x2x128xf32> to vector<2x128xf32>
    %139 = vector.shape_cast %138 : vector<2x128xf32> to vector<2x1x128xf32>
    %140 = arith.mulf %132, %132 : vector<2x1x128xf32>
    %141 = arith.subf %139, %140 : vector<2x1x128xf32>
    %cst_51 = arith.constant 0.000000e+00 : f32
    %142 = vector.broadcast %cst_51 : f32 to vector<2x1x128xf32>
    %143 = arith.maximumf %141, %142 : vector<2x1x128xf32>
    %144 = vector.broadcast %132 : vector<2x1x128xf32> to vector<2x16x128xf32>
    %145 = arith.subf %106, %144 : vector<2x16x128xf32>
    %cst_52 = arith.constant 9.99999974E-6 : f32
    %146 = vector.broadcast %cst_52 : f32 to vector<2x1x128xf32>
    %147 = arith.addf %143, %146 : vector<2x1x128xf32>
    %148 = math.rsqrt %147 : vector<2x1x128xf32>
    %149 = vector.broadcast %148 : vector<2x1x128xf32> to vector<2x16x128xf32>
    %150 = arith.mulf %145, %149 : vector<2x16x128xf32>
    %151 = vector.shape_cast %108 : vector<1x128xf32> to vector<1x1x128xf32>
    %152 = vector.broadcast %151 : vector<1x1x128xf32> to vector<2x16x128xf32>
    %153 = arith.mulf %150, %152 : vector<2x16x128xf32>
    %154 = vector.shape_cast %109 : vector<1x128xf32> to vector<1x1x128xf32>
    %155 = vector.broadcast %154 : vector<1x1x128xf32> to vector<2x16x128xf32>
    %156 = arith.addf %153, %155 : vector<2x16x128xf32>
    %157 = arith.negf %156 : vector<2x16x128xf32>
    %158 = math.exp %157 : vector<2x16x128xf32>
    %cst_53 = arith.constant 1.000000e+00 : f32
    %159 = vector.broadcast %cst_53 : f32 to vector<2x16x128xf32>
    %160 = arith.addf %159, %158 : vector<2x16x128xf32>
    %161 = arith.divf %159, %160 : vector<2x16x128xf32>
    %162 = arith.mulf %156, %161 : vector<2x16x128xf32>
    %c0_54 = arith.constant 0 : index
    %c0_55 = arith.constant 0 : index
    %163 = vector.load %arg11[%c0_54, %c0_55] : memref<1x128xf32, #tpu.memory_space<vmem>>, vector<1x128xf32>
    %164 = vector.shape_cast %162 : vector<2x16x128xf32> to vector<32x128xf32>
    %c1_i32_56 = arith.constant 1 : i32
    %165 = tpu.dynamic_rotate %164 by %c1_i32_56 dim 0 : vector<32x128xf32>, i32 -> vector<32x128xf32>
    %cst_57 = arith.constant 0.000000e+00 : f32
    %166 = vector.shape_cast %19 : vector<32x1xi1> to vector<32x1xi1>
    %167 = vector.broadcast %166 : vector<32x1xi1> to vector<32x128xi1>
    %168 = vector.broadcast %cst_57 : f32 to vector<32x128xf32>
    %169 = arith.select %167, %165, %168 : vector<32x128xi1>, vector<32x128xf32>
    %c31_i32_58 = arith.constant 31 : i32
    %170 = tpu.dynamic_rotate %164 by %c31_i32_58 dim 0 : vector<32x128xf32>, i32 -> vector<32x128xf32>
    %cst_59 = arith.constant 0.000000e+00 : f32
    %171 = vector.shape_cast %21 : vector<32x1xi1> to vector<32x1xi1>
    %172 = vector.broadcast %171 : vector<32x1xi1> to vector<32x128xi1>
    %173 = vector.broadcast %cst_59 : f32 to vector<32x128xf32>
    %174 = arith.select %172, %170, %173 : vector<32x128xi1>, vector<32x128xf32>
    %175 = arith.truncf %169 : vector<32x128xf32> to vector<32x128xbf16>
    %c0_60 = arith.constant 0 : index
    %c0_61 = arith.constant 0 : index
    %c0_62 = arith.constant 0 : index
    %176 = vector.load %arg10[%c0_60, %c0_61, %c0_62] : memref<3x128x128xbf16, #tpu.memory_space<vmem>>, vector<1x128x128xbf16>
    %177 = vector.shape_cast %176 : vector<1x128x128xbf16> to vector<128x128xbf16>
    %cst_63 = arith.constant dense<0.000000e+00> : vector<32x128xf32>
    %178 = tpu.matmul %175, %177, %cst_63 {dimension_numbers = #tpu.dot_dimension_numbers<[1], [0], [0], [1], [0, 0, 1, 1], [], []>} : vector<32x128xbf16>, vector<128x128xbf16>, vector<32x128xf32> -> vector<32x128xf32>
    %179 = arith.truncf %164 : vector<32x128xf32> to vector<32x128xbf16>
    %c1_64 = arith.constant 1 : index
    %c0_65 = arith.constant 0 : index
    %c0_66 = arith.constant 0 : index
    %180 = vector.load %arg10[%c1_64, %c0_65, %c0_66] : memref<3x128x128xbf16, #tpu.memory_space<vmem>>, vector<1x128x128xbf16>
    %181 = vector.shape_cast %180 : vector<1x128x128xbf16> to vector<128x128xbf16>
    %cst_67 = arith.constant dense<0.000000e+00> : vector<32x128xf32>
    %182 = tpu.matmul %179, %181, %cst_67 {dimension_numbers = #tpu.dot_dimension_numbers<[1], [0], [0], [1], [0, 0, 1, 1], [], []>} : vector<32x128xbf16>, vector<128x128xbf16>, vector<32x128xf32> -> vector<32x128xf32>
    %183 = arith.addf %178, %182 : vector<32x128xf32>
    %184 = arith.truncf %174 : vector<32x128xf32> to vector<32x128xbf16>
    %c2_68 = arith.constant 2 : index
    %c0_69 = arith.constant 0 : index
    %c0_70 = arith.constant 0 : index
    %185 = vector.load %arg10[%c2_68, %c0_69, %c0_70] : memref<3x128x128xbf16, #tpu.memory_space<vmem>>, vector<1x128x128xbf16>
    %186 = vector.shape_cast %185 : vector<1x128x128xbf16> to vector<128x128xbf16>
    %cst_71 = arith.constant dense<0.000000e+00> : vector<32x128xf32>
    %187 = tpu.matmul %184, %186, %cst_71 {dimension_numbers = #tpu.dot_dimension_numbers<[1], [0], [0], [1], [0, 0, 1, 1], [], []>} : vector<32x128xbf16>, vector<128x128xbf16>, vector<32x128xf32> -> vector<32x128xf32>
    %188 = arith.addf %183, %187 : vector<32x128xf32>
    %189 = vector.broadcast %163 : vector<1x128xf32> to vector<32x128xf32>
    %190 = arith.addf %188, %189 : vector<32x128xf32>
    %191 = vector.shape_cast %190 : vector<32x128xf32> to vector<2x16x128xf32>
    %192 = vector.shape_cast %0 : vector<2x16x64xf32> to vector<32x64xf32>
    %193 = arith.truncf %192 : vector<32x64xf32> to vector<32x64xbf16>
    %c0_72 = arith.constant 0 : index
    %c0_73 = arith.constant 0 : index
    %194 = vector.load %arg12[%c0_72, %c0_73] : memref<64x128xbf16, #tpu.memory_space<vmem>>, vector<64x128xbf16>
    %cst_74 = arith.constant dense<0.000000e+00> : vector<32x128xf32>
    %195 = tpu.matmul %193, %194, %cst_74 {dimension_numbers = #tpu.dot_dimension_numbers<[1], [0], [0], [1], [0, 0, 1, 1], [], []>} : vector<32x64xbf16>, vector<64x128xbf16>, vector<32x128xf32> -> vector<32x128xf32>
    %c0_75 = arith.constant 0 : index
    %c0_76 = arith.constant 0 : index
    %196 = vector.load %arg13[%c0_75, %c0_76] : memref<1x128xf32, #tpu.memory_space<vmem>>, vector<1x128xf32>
    %197 = vector.broadcast %196 : vector<1x128xf32> to vector<32x128xf32>
    %198 = arith.addf %195, %197 : vector<32x128xf32>
    %199 = vector.shape_cast %198 : vector<32x128xf32> to vector<2x16x128xf32>
    %200 = arith.addf %191, %199 : vector<2x16x128xf32>
    %c0_77 = arith.constant 0 : index
    %c0_78 = arith.constant 0 : index
    %c0_79 = arith.constant 0 : index
    %201 = vector.load %arg14[%c0_77, %c0_78, %c0_79] : memref<2x16x128xf32, #tpu.memory_space<vmem>>, vector<2x16x128xf32>
    tpu.vector_store %arg14[%c0_77, %c0_78, %c0_79], %200 {strides = array<i32>} : memref<2x16x128xf32, #tpu.memory_space<vmem>>, vector<2x16x128xf32>,
    return
  }
  func.func @transform_0(%arg0: i32) -> (i32, i32, i32) {
    %c0_i32 = arith.constant 0 : i32
    %c0_i32_0 = arith.constant 0 : i32
    %c0_i32_1 = arith.constant 0 : i32
    return %arg0, %c0_i32, %c0_i32_0 : i32, i32, i32
  }
  func.func @transform_1(%arg0: i32) -> (i32, i32) {
    %c0_i32 = arith.constant 0 : i32
    %c0_i32_0 = arith.constant 0 : i32
    %c0_i32_1 = arith.constant 0 : i32
    return %c0_i32, %c0_i32_0 : i32, i32
  }
  func.func @transform_2(%arg0: i32) -> (i32, i32) {
    %c0_i32 = arith.constant 0 : i32
    %c0_i32_0 = arith.constant 0 : i32
    %c0_i32_1 = arith.constant 0 : i32
    return %c0_i32, %c0_i32_0 : i32, i32
  }
  func.func @transform_3(%arg0: i32) -> (i32, i32) {
    %c0_i32 = arith.constant 0 : i32
    %c0_i32_0 = arith.constant 0 : i32
    %c0_i32_1 = arith.constant 0 : i32
    return %c0_i32, %c0_i32_0 : i32, i32
  }
  func.func @transform_4(%arg0: i32) -> (i32, i32, i32) {
    %c0_i32 = arith.constant 0 : i32
    %c0_i32_0 = arith.constant 0 : i32
    %c0_i32_1 = arith.constant 0 : i32
    %c0_i32_2 = arith.constant 0 : i32
    return %c0_i32, %c0_i32_0, %c0_i32_1 : i32, i32, i32
  }
  func.func @transform_5(%arg0: i32) -> (i32, i32) {
    %c0_i32 = arith.constant 0 : i32
    %c0_i32_0 = arith.constant 0 : i32
    %c0_i32_1 = arith.constant 0 : i32
    return %c0_i32, %c0_i32_0 : i32, i32
  }
  func.func @transform_6(%arg0: i32) -> (i32, i32) {
    %c0_i32 = arith.constant 0 : i32
    %c0_i32_0 = arith.constant 0 : i32
    %c0_i32_1 = arith.constant 0 : i32
    return %c0_i32, %c0_i32_0 : i32, i32
  }
  func.func @transform_7(%arg0: i32) -> (i32, i32) {
    %c0_i32 = arith.constant 0 : i32
    %c0_i32_0 = arith.constant 0 : i32
    %c0_i32_1 = arith.constant 0 : i32
    return %c0_i32, %c0_i32_0 : i32, i32
  }
  func.func @transform_8(%arg0: i32) -> (i32, i32) {
    %c0_i32 = arith.constant 0 : i32
    %c0_i32_0 = arith.constant 0 : i32
    %c0_i32_1 = arith.constant 0 : i32
    return %c0_i32, %c0_i32_0 : i32, i32
  }
  func.func @transform_9(%arg0: i32) -> (i32, i32, i32) {
    %c0_i32 = arith.constant 0 : i32
    %c0_i32_0 = arith.constant 0 : i32
    %c0_i32_1 = arith.constant 0 : i32
    %c0_i32_2 = arith.constant 0 : i32
    return %c0_i32, %c0_i32_0, %c0_i32_1 : i32, i32, i32
  }
  func.func @transform_10(%arg0: i32) -> (i32, i32) {
    %c0_i32 = arith.constant 0 : i32
    %c0_i32_0 = arith.constant 0 : i32
    %c0_i32_1 = arith.constant 0 : i32
    return %c0_i32, %c0_i32_0 : i32, i32
  }
  func.func @transform_11(%arg0: i32) -> (i32, i32) {
    %c0_i32 = arith.constant 0 : i32
    %c0_i32_0 = arith.constant 0 : i32
    %c0_i32_1 = arith.constant 0 : i32
    return %c0_i32, %c0_i32_0 : i32, i32
  }
  func.func @transform_12(%arg0: i32) -> (i32, i32) {
    %c0_i32 = arith.constant 0 : i32
    %c0_i32_0 = arith.constant 0 : i32
    %c0_i32_1 = arith.constant 0 : i32
    return %c0_i32, %c0_i32_0 : i32, i32
  }
  func.func @transform_13(%arg0: i32) -> (i32, i32, i32) {
    %c0_i32 = arith.constant 0 : i32
    %c0_i32_0 = arith.constant 0 : i32
    %c0_i32_1 = arith.constant 0 : i32
    return %arg0, %c0_i32, %c0_i32_0 : i32, i32, i32
  }
}

</mosaic_0001>

<bundles_post_ra>
// kernel: resnet_block_forward.1
= control target key start
LH: loop header
LB: loop body
LE: loop exit
PB: predicated region body
PF: predicated region fallthrough
CT: control target
= control target key end

     0   :  { %vm113_vm0 = vcmask 523264   ;;  %vm156_vm1 = vcmask 517120   ;;  %vm636_vm8 = vcmask 1041408   ;;  %vm1645_vm9 = vmmov 1   ;;  %s2083_s0 = inlined_call_operand.vmem [shape: f32[2,16,64], index: 0, kind: input, shape index: {}]   ;;  %s2084_s1 = inlined_call_operand.vmem [shape: f32[2,64], index: 1, kind: input, shape index: {}]   ;;  %s2085_s4 = inlined_call_operand.vmem [shape: bf16[3,64,128], index: 4, kind: input, shape index: {}]   ;;  %s2086_s2 = inlined_call_operand.vmem [shape: f32[1,64], index: 2, kind: input, shape index: {}]   ;;  %s2087_s3 = inlined_call_operand.vmem [shape: f32[1,64], index: 3, kind: input, shape index: {}]   ;;  %s2088_s5 = inlined_call_operand.vmem [shape: f32[1,128], index: 5, kind: input, shape index: {}]   ;;  %s2089_s6 = inlined_call_operand.vmem [shape: f32[2,128], index: 6, kind: input, shape index: {}]   ;;  %s2090_s9 = inlined_call_operand.vmem [shape: bf16[3,128,128], index: 9, kind: input, shape index: {}]   ;;  %s2091_s11 = inlined_call_operand.vmem [shape: bf16[64,128], index: 11, kind: input, shape index: {}]   ;;  %s2092_s7 = inlined_call_operand.vmem [shape: f32[1,128], index: 7, kind: input, shape index: {}]   ;;  %s2093_s8 = inlined_call_operand.vmem [shape: f32[1,128], index: 8, kind: input, shape index: {}]   ;;  %s2094_s10 = inlined_call_operand.vmem [shape: f32[1,128], index: 10, kind: input, shape index: {}]   ;;  %s2095_s12 = inlined_call_operand.vmem [shape: f32[1,128], index: 12, kind: input, shape index: {}]   ;;  %s2096_s13 = inlined_call_operand.vmem [shape: f32[2,16,128], index: 13, kind: output, shape index: {}]  }
   0x1   :  { %v1719_v0 = vld [vmem:[%s2083_s0] sm:$0xff]  ;;  %v1724_v1 = vld [vmem:[%s2083_s0 + $0x8] sm:$0xff]  ;;  %v1737_v6 = vld [vmem:[%s2083_s0 + $0x10] sm:$0xff] }
   0x2   :  { %v114_v2 = vsel %vm113_vm0, %v1719_v0, 0.0  ;;  %v115_v3 = vsel %vm113_vm0, %v1724_v1, 0.0  ;;  %v132_v4 = vmul.f32 %v1719_v0, %v1719_v0  ;;  %v133_v5 = vmul.f32 %v1724_v1, %v1724_v1  ;;  %v1742_v7 = vld [vmem:[%s2083_s0 + $0x18] sm:$0xff]  ;;  %v110_v36 = vld [vmem:[%s2084_s1] sm:$0x3]  ;;  %v1562_v54 = vld [vmem:[%s2085_s4 + $0x28] sm:$0xff]  }
   0x3   :  { %v116_v8 = vadd.f32 %v115_v3, %v114_v2  ;;  %v123_v9 = vsel %vm113_vm0, %v1737_v6, 0.0  ;;  %v124_v10 = vsel %vm113_vm0, %v1742_v7, 0.0  ;;  %v134_v11 = vmul.f32 %v1737_v6, %v1737_v6  ;;  %v1561_v53 = vld [vmem:[%s2085_s4 + $0x20] sm:$0xff]   ;;  %v1563_v55 = vld [vmem:[%s2085_s4 + $0x30] sm:$0xff]   ;;  %v1564_v56 = vld [vmem:[%s2085_s4 + $0x38] sm:$0xff]  }
   0x4   :  { %v136_v12 = vsel %vm113_vm0, %v132_v4, 0.0  ;;  %v137_v13 = vsel %vm113_vm0, %v133_v5, 0.0  ;;  %v125_v14 = vadd.f32 %v124_v10, %v123_v9  ;;  %v135_v15 = vmul.f32 %v1742_v7, %v1742_v7  ;;  %1424 = vmatprep.subr.bf16.mxu0 %v1561_v53  ;;  %v1778_v57 = vld [vmem:[%s2085_s4] sm:$0xff]  }
   0x5   :  { %v117_v16 = vrot.slane %v116_v8, 4  ;;  %v138_v17 = vadd.f32 %v137_v13, %v136_v12  ;;  %v145_v18 = vsel %vm113_vm0, %v134_v11, 0.0  ;;  %1425 = vmatpush3.bf16.msra.mxu0 %v1561_v53 }
   0x6   :  { %v126_v19 = vrot.slane %v125_v14, 4  ;;  %v146_v20 = vsel %vm113_vm0, %v135_v15, 0.0  ;;  %1426 = vmatprep.subr.bf16.mxu0 %v1562_v54 }
   0x7   :  { %v118_v21 = vadd.f32 %v117_v16, %v116_v8  ;;  %v139_v22 = vrot.slane %v138_v17, 4  ;;  %v147_v23 = vadd.f32 %v146_v20, %v145_v18 }
   0x8   :  { %v127_v24 = vadd.f32 %v126_v19, %v125_v14 }
   0x9   :  { %v119_v25 = vrot.slane %v118_v21, 2  ;;  %v140_v26 = vadd.f32 %v139_v22, %v138_v17  ;;  %v148_v27 = vrot.slane %v147_v23, 4  ;;  %1427 = vmatpush3.bf16.msra.mxu0 %v1562_v54 }
   0xa   :  { %v128_v28 = vrot.slane %v127_v24, 2  ;;  %1428 = vmatprep.subr.bf16.mxu0 %v1563_v55 }
   0xb   :  { %v120_v29 = vadd.f32 %v119_v25, %v118_v21  ;;  %v141_v30 = vrot.slane %v140_v26, 2  ;;  %v149_v31 = vadd.f32 %v148_v27, %v147_v23 }
   0xc   :  { %v129_v32 = vadd.f32 %v128_v28, %v127_v24 }
   0xd   :  { %v121_v33 = vrot.slane %v120_v29, 1  ;;  %v142_v34 = vadd.f32 %v141_v30, %v140_v26  ;;  %v150_v35 = vrot.slane %v149_v31, 2  ;;  %1429 = vmatpush3.bf16.msra.mxu0 %v1563_v55 }
   0xe   :  { %v130_v37 = vrot.slane %v129_v32, 1  ;;  %1430 = vmatprep.subr.bf16.mxu0 %v1564_v56 }
   0xf   :  { %v122_v38 = vadd.f32 %v121_v33, %v120_v29  ;;  %v143_v39 = vrot.slane %v142_v34, 1  ;;  %v151_v40 = vadd.f32 %v150_v35, %v149_v31 }
  0x10   :  { %v131_v41 = vadd.f32 %v130_v37, %v129_v32 }
  0x11   :  { %v154_v42 = vmul.f32 %v122_v38, %v110_v36  ;;  %v144_v43 = vadd.f32 %v143_v39, %v142_v34  ;;  %v152_v44 = vrot.slane %v151_v40, 1  ;;  %1431 = vmatpush3.bf16.msra.mxu0 %v1564_v56 }
  0x12   :  { %v155_v45 = vmul.f32 %v131_v41, %v110_v36  ;;  %1436 = vmatprep.subr.bf16.mxu0 %v1778_v57 }
  0x13   :  { %v157_v46 = vsel %vm156_vm1, %v154_v42, 0.0  ;;  %v163_v47 = vmul.f32 %v144_v43, %v110_v36  ;;  %v153_v48 = vadd.f32 %v152_v44, %v151_v40 }
  0x14   :  { %158 = vadd.xlane.f32.xlu0 %v157_v46  ;;  %v160_v50 = vsel %vm156_vm1, %v155_v45, 0.0 }
  0x15   :  { %v165_v49 = vsel %vm156_vm1, %v163_v47, 0.0  ;;  %v164_v51 = vmul.f32 %v153_v48, %v110_v36 }
  0x16   :  { %166 = vadd.xlane.f32.xlu1 %v165_v49  ;;  %v1247_v49 = vld [vmem:[%s2086_s2] ss:$0 sm:$0xff] }
  0x17   :  { %v168_v52 = vsel %vm156_vm1, %v164_v51, 0.0 }
  0x18   :  { %161 = vadd.xlane.f32.xlu0 %v160_v50 }
  0x1a   :  { %169 = vadd.xlane.f32.xlu1 %v168_v52  ;;  %v1248_v52 = vld [vmem:[%s2087_s3] ss:$0 sm:$0xff] }
  0xa1   :  { %v159_v58 = vpop.xlane.xlu0 %158 }
  0xa2   :  { %v171_v59 = vmul.f32 0.001953125, %v159_v58 }
  0xa3   :  { %v167_v60 = vpop.xlane.xlu1 %166 }
  0xa4   :  { %v173_v61 = vmul.f32 %v171_v59, %v110_v36  ;;  %v189_v62 = vmul.f32 0.001953125, %v167_v60 }
  0xa5   :  { %v162_v63 = vpop.xlane.xlu0 %161 }
  0xa6   :  { %v175_v2 = vsel %vm156_vm1, %v173_v61, 0.0  ;;  %v191_v3 = vmul.f32 %v189_v62, %v110_v36  ;;  %v172_v4 = vmul.f32 0.001953125, %v162_v63 }
  0xa7   :  { %v176_v5 = vrot.slane %v175_v2, 4  ;;  %v170_v8 = vpop.xlane.xlu1 %169 }
  0xa8   :  { %v193_v9 = vsel %vm156_vm1, %v191_v3, 0.0  ;;  %v174_v10 = vmul.f32 %v172_v4, %v110_v36  ;;  %v190_v11 = vmul.f32 0.001953125, %v170_v8 }
  0xa9   :  { %v177_v12 = vadd.f32 %v176_v5, %v175_v2  ;;  %v194_v13 = vrot.slane %v193_v9, 4 }
  0xaa   :  { %v182_v14 = vsel %vm156_vm1, %v174_v10, 0.0  ;;  %v192_v15 = vmul.f32 %v190_v11, %v110_v36 }
  0xab   :  { %v178_v16 = vrot.slane %v177_v12, 2  ;;  %v195_v17 = vadd.f32 %v194_v13, %v193_v9  ;;  %v183_v18 = vrot.slane %v182_v14, 4 }
  0xac   :  { %v200_v19 = vsel %vm156_vm1, %v192_v15, 0.0  ;;  %v49_v15 = vlaneseq }
  0xad   :  { %v179_v20 = vadd.f32 %v178_v16, %v177_v12  ;;  %v196_v21 = vrot.slane %v195_v17, 2  ;;  %v184_v22 = vadd.f32 %v183_v18, %v182_v14  ;;  %v201_v23 = vrot.slane %v200_v19, 4 }
  0xaf   :  { %v180_v24 = vrot.slane %v179_v20, 1  ;;  %v197_v25 = vadd.f32 %v196_v21, %v195_v17  ;;  %v185_v26 = vrot.slane %v184_v22, 2  ;;  %v202_v27 = vadd.f32 %v201_v23, %v200_v19 }
  0xb1   :  { %v181_v28 = vadd.f32 %v180_v24, %v179_v20  ;;  %v198_v29 = vrot.slane %v197_v25, 1  ;;  %v186_v30 = vadd.f32 %v185_v26, %v184_v22  ;;  %v203_v31 = vrot.slane %v202_v27, 2 }
  0xb2   :  { %v1797_v20 = vshrl.u32 %v49_v15, 7 }
  0xb3   :  { %v199_v32 = vadd.f32 %v198_v29, %v197_v25  ;;  %v207_v33 = vmul.f32 %v181_v28, %v181_v28  ;;  %v187_v34 = vrot.slane %v186_v30, 1  ;;  %v204_v35 = vadd.f32 %v203_v31, %v202_v27  ;;  %v1590_v31 = vld [vmem:[%s2090_s9 + $0x88] sm:$0xff]  }
  0xb4   :  { %v213_v46 = vsub.f32 %v1719_v0, %v181_v28  ;;  %v214_v47 = vsub.f32 %v1724_v1, %v181_v28  ;;  %v58_v23 = vand.u32 15, %v1797_v20  ;;  %vm278_vm3 = vcmp.lt.s32.totalorder %v1797_v20, 1 }
  0xb5   :  { %v209_v36 = vsub.f32 %v199_v32, %v207_v33  ;;  %v188_v37 = vadd.f32 %v187_v34, %v186_v30  ;;  %v205_v38 = vrot.slane %v204_v35, 1  ;;  %v1566_v30 = vld [vmem:[%s2085_s4 + $0x8] sm:$0xff]   ;;  %v52_v34 = vadd.s32 16, %v1797_v20 }
  0xb6   :  { %vm1809_vm2 = vcmp.ne.s32.totalorder %v58_v23, 0  ;;  %vm299_vm5 = vcmp.lt.s32.totalorder %v1797_v20, 7 }
  0xb7   :  { %v211_v39 = vmax.f32 %v209_v36, 0.0  ;;  %v206_v40 = vadd.f32 %v205_v38, %v204_v35  ;;  %v208_v41 = vmul.f32 %v188_v37, %v188_v37  ;;  %v215_v55 = vsub.f32 %v1737_v6, %v188_v37  ;;  %vm1326_vm10 = vmpackc.low %vm1645_vm9, %vm1809_vm2 }
  0xb8   :  { %v216_v56 = vsub.f32 %v1742_v7, %v188_v37  ;;  %v51_v37 = vadd.s32 8, %v1797_v20 }
  0xb9   :  { %v217_v42 = vadd.f32 1e-05, %v211_v39  ;;  %v210_v43 = vsub.f32 %v206_v40, %v208_v41  ;;  %v1567_v39 = vld [vmem:[%s2085_s4 + $0x10] sm:$0xff]   ;;  %v72_v41 = vand.u32 15, %v52_v34 }
  0xbb   :  { %1601 = vrsqrt.f32 %v217_v42  ;;  %v212_v44 = vmax.f32 %v210_v43, 0.0  ;;  %v1568_v43 = vld [vmem:[%s2085_s4 + $0x18] sm:$0xff]   ;;  %vm1833_vm4 = vcmp.ne.s32.totalorder %v72_v41, 0 }
  0xbc   :  { %vm1329_vm11 = vmpackc.low %vm1645_vm9, %vm1833_vm4 }
  0xbd   :  { %v218_v45 = vadd.f32 1e-05, %v212_v44 }
  0xbf   :  { %1603 = vrsqrt.f32 %v218_v45  ;;  %v1591_v45 = vld [vmem:[%s2090_s9 + $0x90] sm:$0xff]  }
  0xc5   :  { %v1602_v48 = vpop.eup %1601 }
  0xc6   :  { %v221_v50 = vmul.f32 %v1602_v48, %v213_v46  ;;  %v222_v51 = vmul.f32 %v1602_v48, %v214_v47  ;;  %v1592_v47 = vld [vmem:[%s2090_s9 + $0x98] sm:$0xff]  }
  0xc8   :  { %v231_v53 = vmul.f32 %v1247_v49, %v221_v50  ;;  %v232_v54 = vmul.f32 %v1247_v49, %v222_v51  ;;  %v1569_v50 = vld [vmem:[%s2085_s4 + $0x40] sm:$0xff]  }
  0xc9   :  { %v1604_v0 = vpop.eup %1603 }
  0xca   :  { %v241_v58 = vadd.f32 %v1248_v52, %v231_v53  ;;  %v242_v1 = vadd.f32 %v1248_v52, %v232_v54  ;;  %v223_v59 = vmul.f32 %v1604_v0, %v215_v55  ;;  %v224_v60 = vmul.f32 %v1604_v0, %v216_v56  ;;  %v1570_v56 = vld [vmem:[%s2085_s4 + $0x48] sm:$0xff]  }
  0xcc   :  { %v1249_v61 = vmul.f32 -1.442695, %v241_v58  ;;  %v1250_v62 = vmul.f32 -1.442695, %v242_v1  ;;  %v233_v63 = vmul.f32 %v1247_v49, %v223_v59  ;;  %v234_v2 = vmul.f32 %v1247_v49, %v224_v60 }
  0xce   :  { %1605 = vpow2.f32 %v1249_v61  ;;  %v243_v3 = vadd.f32 %v1248_v52, %v233_v63  ;;  %v244_v4 = vadd.f32 %v1248_v52, %v234_v2  ;;  %v1572_v61 = vld [vmem:[%s2085_s4 + $0x58] sm:$0xff]  }
  0xcf   :  { %1607 = vpow2.f32 %v1250_v62  ;;  %v1599_v62 = vld [vmem:[%s2091_s11 + $0x10] sm:$0xff]  }
  0xd0   :  { %v1251_v5 = vmul.f32 -1.442695, %v243_v3  ;;  %v1252_v8 = vmul.f32 -1.442695, %v244_v4 }
  0xd2   :  { %1609 = vpow2.f32 %v1251_v5  ;;  %v1287_v5 = vld [vmem:[%s2088_s5] ss:$0 sm:$0xff] }
  0xd3   :  { %1611 = vpow2.f32 %v1252_v8 }
  0xd8   :  { %v1606_v6 = vpop.eup %1605 }
  0xd9   :  { %v1608_v9 = vpop.eup %1607  ;;  %v257_v7 = vadd.f32 1.0, %v1606_v6 }
  0xda   :  { %v258_v10 = vadd.f32 1.0, %v1608_v9 }
  0xdb   :  { %1613 = vrcp.f32 %v257_v7 }
  0xdc   :  { %1615 = vrcp.f32 %v258_v10  ;;  %v1610_v11 = vpop.eup %1609 }
  0xdd   :  { %v1612_v12 = vpop.eup %1611  ;;  %v259_v13 = vadd.f32 1.0, %v1610_v11 }
  0xde   :  { %v260_v14 = vadd.f32 1.0, %v1612_v12 }
  0xdf   :  { %1617 = vrcp.f32 %v259_v13 }
  0xe0   :  { %1619 = vrcp.f32 %v260_v14 }
  0xe5   :  { %v1614_v16 = vpop.eup %1613 }
  0xe6   :  { %v1616_v17 = vpop.eup %1615  ;;  %v1795_v18 = vmul.f32 %v1614_v16, %v241_v58  ;;  %v53_v58 = vadd.s32 24, %v1797_v20  ;;  %v1598_v20 = vld [vmem:[%s2091_s11 + $0x8] sm:$0xff]  }
  0xe7   :  { %v270_v19 = vmul.f32 %v1616_v17, %v242_v1  ;;  %v1571_v1 = vld [vmem:[%s2085_s4 + $0x50] sm:$0xff]  }
  0xe8   :  { %v274_v27 = vrot.slane %v1795_v18, 7  ;;  %v295_v49 = vrot.slane %v1795_v18, 1  ;;  %v79_v60 = vand.u32 15, %v53_v58  ;;  %v1573_v58 = vld [vmem:[%s2090_s9 + $0x40] sm:$0xff]  }
  0xe9   :  { %v326_v21 = vpack.c.bf16 %v270_v19, %v1795_v18  ;;  %v1618_v22 = vpop.eup %1617  ;;  %v275_v28 = vrot.slane %v270_v19, 7  ;;  %v296_v44 = vrot.slane %v270_v19, 1 }
  0xea   :  { %v1620_v24 = vpop.eup %1619  ;;  %v1802_v25 = vmul.f32 %v1618_v22, %v243_v3  ;;  %vm1870_vm7 = vcmp.ne.s32.totalorder %v79_v60, 15  ;;  %v1576_v60 = vld [vmem:[%s2090_s9 + $0x8] sm:$0xff]  }
  0xeb   :  { %1432 = vmatprep.mubr.msk.bf16.mxu0 %vm113_vm0, %v326_v21  ;;  %v272_v26 = vmul.f32 %v1620_v24, %v244_v4  ;;  %v281_v35 = vsel %vm278_vm3, %v274_v27, %v275_v28  ;;  %v302_v55 = vsel %vm299_vm5, %v295_v49, %v296_v44  ;;  %vm1359_vm13 = vmpackc.low %vm1870_vm7, %vm1645_vm9 }
  0xec   :  { %v276_v40 = vrot.slane %v1802_v25, 7  ;;  %v297_v42 = vrot.slane %v1802_v25, 1 }
  0xed   :  { %v327_v29 = vpack.c.bf16 %v272_v26, %v1802_v25  ;;  %v277_v32 = vrot.slane %v272_v26, 7  ;;  %v298_v59 = vrot.slane %v272_v26, 1 }
  0xee   :  { %v280_v46 = vsel %vm278_vm3, %v275_v28, %v276_v40  ;;  %v301_v48 = vsel %vm299_vm5, %v296_v44, %v297_v42 }
  0xef   :  { %1433 = vmatmul.mubr.msk.bf16.vlgmr.msra.gmra.mrb[0].mxu0 %vm113_vm0, %v327_v29  ;;  %v282_v33 = vsel %vm278_vm3, %v277_v32, %v274_v27  ;;  %v279_v51 = vsel %vm278_vm3, %v276_v40, %v277_v32  ;;  %v293_v52 = vsel %vm1833_vm4, %v280_v46, 0.0  ;;  %v303_v63 = vsel %vm299_vm5, %v298_v59, %v295_v49  ;;  %v1907_v40 = vld [vmem:[%s2089_s6] sm:$0x3] }
  0xf0   :  { %1437 = vmatpush3.bf16.msra.mxu0 %v1778_v57  ;;  %v291_v36 = vsel %vm1809_vm2, %v282_v33, 0.0  ;;  %v65_v57 = vand.u32 15, %v51_v37  ;;  %v317_v54 = vpack.c.bf16 %v279_v51, %v293_v52  ;;  %v300_v2 = vsel %vm299_vm5, %v297_v42, %v298_v59  ;;  %v1575_v59 = vld [vmem:[%s2090_s9 + $0x48] sm:$0xff]  }
  0xf1   :  { %1438 = vmatprep.subr.bf16.mxu0 %v1566_v30  ;;  %v316_v38 = vpack.c.bf16 %v281_v35, %v291_v36  ;;  %v315_v3 = vsel %vm1870_vm7, %v303_v63, 0.0  ;;  %v1578_v63 = vld [vmem:[%s2090_s9 + $0x10] sm:$0xff]  }
  0xf2   :  { %vm1840_vm6 = vcmp.ne.s32.totalorder %v65_v57, 15  ;;  %v496_v4 = vpack.c.bf16 %v315_v3, %v300_v2  ;;  %v1579_v2 = vld [vmem:[%s2090_s9 + $0x58] sm:$0xff]  }
  0xf3   :  { %1444 = vmatprep.mubr.msk.bf16.mxu0 %vm113_vm0, %v316_v38  ;;  %v313_v53 = vsel %vm1840_vm6, %v301_v48, 0.0  ;;  %v1580_v3 = vld [vmem:[%s2090_s9 + $0x18] sm:$0xff]   ;;  %vm1356_vm12 = vmpackc.low %vm1840_vm6, %vm1645_vm9 }
  0xf4   :  { %1439 = vmatpush3.bf16.msra.mxu0 %v1566_v30  ;;  %v495_v0 = vpack.c.bf16 %v313_v53, %v302_v55 }
  0xf5   :  { %1440 = vmatprep.subr.bf16.mxu0 %v1567_v39 }
  0xf8   :  { %1441 = vmatpush3.bf16.msra.mxu0 %v1567_v39 }
  0xf9   :  { %1442 = vmatprep.subr.bf16.mxu0 %v1568_v43 }
  0xfc   :  { %1443 = vmatpush3.bf16.msra.mxu0 %v1568_v43 }
  0xfd   :  { %1448 = vmatprep.subr.bf16.mxu0 %v1569_v50 }
  0xff   :  { %1445 = vmatmul.mubr.msk.bf16.vlgmr.msra.gmra.mrb[0].mxu0 %vm113_vm0, %v317_v54 }
 0x100   :  { %1449 = vmatpush3.bf16.msra.mxu0 %v1569_v50  ;;  %1456 = vmatprep.mubr.msk.bf16.mxu0 %vm113_vm0, %v495_v0 }
 0x101   :  { %1450 = vmatprep.subr.bf16.mxu0 %v1570_v56 }
 0x104   :  { %1451 = vmatpush3.bf16.msra.mxu0 %v1570_v56 }
 0x105   :  { %1452 = vmatprep.subr.bf16.mxu0 %v1571_v1 }
 0x108   :  { %1453 = vmatpush3.bf16.msra.mxu0 %v1571_v1  ;;  %v1574_v1 = vld [vmem:[%s2090_s9] sm:$0xff]  }
 0x109   :  { %1454 = vmatprep.subr.bf16.mxu0 %v1572_v61  ;;  %1480 = vmatprep.subr.bf16.mxu1 %v1574_v1 }
 0x10a   :  { %1481 = vmatpush3.bf16.msra.mxu1 %v1574_v1 }
 0x10b   :  { %1482 = vmatprep.subr.bf16.mxu1 %v1576_v60 }
 0x10c   :  { %1455 = vmatpush3.bf16.msra.mxu0 %v1572_v61  ;;  %v1577_v61 = vld [vmem:[%s2090_s9 + $0x50] sm:$0xff]  }
 0x10d   :  { %1460 = vmatprep.subr.bf16.mxu0 %v1573_v58 }
 0x10e   :  { %1483 = vmatpush3.bf16.msra.mxu1 %v1576_v60 }
 0x10f   :  { %1457 = vmatmul.mubr.msk.bf16.vlgmr.msra.gmra.mrb[0].mxu0 %vm113_vm0, %v496_v4  ;;  %1484 = vmatprep.subr.bf16.mxu1 %v1578_v63  ;;  %v1581_v4 = vld [vmem:[%s2090_s9 + $0x60] sm:$0xff]  }
 0x110   :  { %1461 = vmatpush3.bf16.msra.mxu0 %v1573_v58 }
 0x111   :  { %1462 = vmatprep.subr.bf16.mxu0 %v1575_v59 }
 0x112   :  { %1485 = vmatpush3.bf16.msra.mxu1 %v1578_v63 }
 0x113   :  { %1486 = vmatprep.subr.bf16.mxu1 %v1580_v3 }
 0x114   :  { %1463 = vmatpush3.bf16.msra.mxu0 %v1575_v59 }
 0x115   :  { %1464 = vmatprep.subr.bf16.mxu0 %v1577_v61 }
 0x116   :  { %1487 = vmatpush3.bf16.msra.mxu1 %v1580_v3 }
 0x118   :  { %1465 = vmatpush3.bf16.msra.mxu0 %v1577_v61 }
 0x119   :  { %1466 = vmatprep.subr.bf16.mxu0 %v1579_v2 }
 0x11c   :  { %1467 = vmatpush3.bf16.msra.mxu0 %v1579_v2 }
 0x11d   :  { %1468 = vmatprep.subr.bf16.mxu0 %v1581_v4 }
 0x120   :  { %1469 = vmatpush3.bf16.msra.mxu0 %v1581_v4 }
 0x1e2   :  { %v1458_v8 = vpop.f32.mrb[0].mxu0 }
 0x1e3   :  { %v1884_v6 = vadd.f32 %v1458_v8, %v1287_v5  ;;  %v570_v9 = vpop.f32.mrb[1].mxu0  ;;  %v1583_v8 = vld [vmem:[%s2090_s9 + $0x68] sm:$0xff]  }
 0x1e4   :  { %v1886_v7 = vadd.f32 %v1287_v5, %v570_v9  ;;  %v1459_v10 = vpop.f32.mrb[2].mxu0  ;;  %v1584_v9 = vld [vmem:[%s2090_s9 + $0x28] sm:$0xff]   ;;  %1470 = vmatprep.subr.bf16.mxu0 %v1583_v8 }
 0x1e5   :  { %v1888_v11 = vadd.f32 %v1459_v10, %v1287_v5  ;;  %v573_v12 = vpop.f32.mrb[3].mxu0  ;;  %v618_v14 = vmul.f32 %v1884_v6, %v1884_v6  ;;  %v1585_v10 = vld [vmem:[%s2090_s9 + $0x70] sm:$0xff]   ;;  %1471 = vmatpush3.bf16.msra.mxu0 %v1583_v8 }
 0x1e6   :  { %v1890_v13 = vadd.f32 %v1287_v5, %v573_v12  ;;  %v616_v17 = vmul.f32 %v1886_v7, %v1886_v7  ;;  %v1582_v5 = vld [vmem:[%s2090_s9 + $0x20] sm:$0xff]   ;;  %v1586_v12 = vld [vmem:[%s2090_s9 + $0x30] sm:$0xff]   ;;  %1472 = vmatprep.subr.bf16.mxu0 %v1585_v10 }
 0x1e7   :  { %v609_v15 = vadd.f32 %v1888_v11, %v1884_v6  ;;  %v619_v16 = vmul.f32 %v1888_v11, %v1888_v11  ;;  %1488 = vmatprep.subr.bf16.mxu1 %v1582_v5 }
 0x1e8   :  { %v602_v18 = vadd.f32 %v1890_v13, %v1886_v7  ;;  %v617_v19 = vmul.f32 %v1890_v13, %v1890_v13  ;;  %1489 = vmatpush3.bf16.msra.mxu1 %v1582_v5 }
 0x1e9   :  { %v610_v21 = vrot.slane %v609_v15, 4  ;;  %v627_v22 = vadd.f32 %v619_v16, %v618_v14  ;;  %1490 = vmatprep.subr.bf16.mxu1 %v1584_v9  ;;  %v1587_v14 = vld [vmem:[%s2090_s9 + $0x78] sm:$0xff]   ;;  %1473 = vmatpush3.bf16.msra.mxu0 %v1585_v10  ;;  %v1968_v16 = vld [vmem:[%s2090_s9 + $0x80] sm:$0xff]  }
 0x1ea   :  { %v603_v23 = vrot.slane %v602_v18, 4  ;;  %v620_v24 = vadd.f32 %v617_v19, %v616_v17  ;;  %1474 = vmatprep.subr.bf16.mxu0 %v1587_v14 }
 0x1eb   :  { %v611_v25 = vadd.f32 %v610_v21, %v609_v15  ;;  %v628_v26 = vrot.slane %v627_v22, 4  ;;  %v1588_v15 = vld [vmem:[%s2090_s9 + $0x38] sm:$0xff]  }
 0x1ec   :  { %v604_v27 = vadd.f32 %v603_v23, %v602_v18  ;;  %v621_v28 = vrot.slane %v620_v24, 4  ;;  %1491 = vmatpush3.bf16.msra.mxu1 %v1584_v9 }
 0x1ed   :  { %v612_v29 = vrot.slane %v611_v25, 2  ;;  %v629_v30 = vadd.f32 %v628_v26, %v627_v22  ;;  %1492 = vmatprep.subr.bf16.mxu1 %v1586_v12  ;;  %1475 = vmatpush3.bf16.msra.mxu0 %v1587_v14 }
 0x1ee   :  { %v605_v32 = vrot.slane %v604_v27, 2  ;;  %v622_v33 = vadd.f32 %v621_v28, %v620_v24 }
 0x1ef   :  { %v613_v34 = vadd.f32 %v612_v29, %v611_v25  ;;  %v630_v35 = vrot.slane %v629_v30, 2 }
 0x1f0   :  { %v606_v36 = vadd.f32 %v605_v32, %v604_v27  ;;  %v623_v37 = vrot.slane %v622_v33, 2  ;;  %1493 = vmatpush3.bf16.msra.mxu1 %v1586_v12 }
 0x1f1   :  { %v614_v38 = vrot.slane %v613_v34, 1  ;;  %v631_v39 = vadd.f32 %v630_v35, %v629_v30  ;;  %1494 = vmatprep.subr.bf16.mxu1 %v1588_v15 }
 0x1f2   :  { %v607_v41 = vrot.slane %v606_v36, 1  ;;  %v624_v57 = vadd.f32 %v623_v37, %v622_v33 }
 0x1f3   :  { %v615_v42 = vadd.f32 %v614_v38, %v613_v34  ;;  %v632_v43 = vrot.slane %v631_v39, 1 }
 0x1f4   :  { %v608_v44 = vadd.f32 %v607_v41, %v606_v36  ;;  %v625_v46 = vrot.slane %v624_v57, 1  ;;  %1495 = vmatpush3.bf16.msra.mxu1 %v1588_v15  ;;  %v1288_v15 = vld [vmem:[%s2092_s7] ss:$0 sm:$0xff] }
 0x1f5   :  { %v635_v48 = vmul.f32 %v615_v42, %v1907_v40  ;;  %v633_v49 = vadd.f32 %v632_v43, %v631_v39  ;;  %1500 = vmatprep.subr.bf16.mxu1 %v1968_v16 }
 0x1f6   :  { %v634_v50 = vmul.f32 %v608_v44, %v1907_v40  ;;  %v626_v51 = vadd.f32 %v625_v46, %v624_v57 }
 0x1f7   :  { %v640_v52 = vsel %vm636_vm8, %v635_v48, 0.0  ;;  %v644_v53 = vmul.f32 %v633_v49, %v1907_v40 }
 0x1f8   :  { %641 = vadd.xlane.f32.xlu1 %v640_v52  ;;  %v637_v54 = vsel %vm636_vm8, %v634_v50, 0.0  ;;  %v643_v55 = vmul.f32 %v626_v51, %v1907_v40 }
 0x1f9   :  { %638 = vadd.xlane.f32.xlu0 %v637_v54  ;;  %v648_v56 = vsel %vm636_vm8, %v644_v53, 0.0 }
 0x1fa   :  { %v645_v0 = vsel %vm636_vm8, %v643_v55, 0.0 }
 0x1fc   :  { %649 = vadd.xlane.f32.xlu1 %v648_v56 }
 0x1fd   :  { %646 = vadd.xlane.f32.xlu0 %v645_v0 }
 0x285   :  { %v642_v17 = vpop.xlane.xlu1 %641 }
 0x286   :  { %v652_v18 = vmul.f32 0.0009765625, %v642_v17  ;;  %v639_v19 = vpop.xlane.xlu0 %638 }
 0x287   :  { %v651_v21 = vmul.f32 0.0009765625, %v639_v19 }
 0x288   :  { %v654_v22 = vmul.f32 %v652_v18, %v1907_v40 }
 0x289   :  { %v653_v23 = vmul.f32 %v651_v21, %v1907_v40  ;;  %v650_v24 = vpop.xlane.xlu1 %649  ;;  %v1289_v21 = vld [vmem:[%s2093_s8] ss:$0 sm:$0xff] }
 0x28a   :  { %v662_v25 = vsel %vm636_vm8, %v654_v22, 0.0  ;;  %v670_v26 = vmul.f32 0.0009765625, %v650_v24  ;;  %v647_v27 = vpop.xlane.xlu0 %646 }
 0x28b   :  { %v663_v28 = vrot.slane %v662_v25, 4  ;;  %v655_v29 = vsel %vm636_vm8, %v653_v23, 0.0  ;;  %v669_v30 = vmul.f32 0.0009765625, %v647_v27 }
 0x28c   :  { %v656_v32 = vrot.slane %v655_v29, 4  ;;  %v672_v33 = vmul.f32 %v670_v26, %v1907_v40 }
 0x28d   :  { %v664_v34 = vadd.f32 %v663_v28, %v662_v25  ;;  %v671_v35 = vmul.f32 %v669_v30, %v1907_v40 }
 0x28e   :  { %v657_v36 = vadd.f32 %v656_v32, %v655_v29  ;;  %v680_v37 = vsel %vm636_vm8, %v672_v33, 0.0 }
 0x28f   :  { %v665_v38 = vrot.slane %v664_v34, 2  ;;  %v681_v39 = vrot.slane %v680_v37, 4  ;;  %v673_v41 = vsel %vm636_vm8, %v671_v35, 0.0 }
 0x290   :  { %v658_v57 = vrot.slane %v657_v36, 2  ;;  %v674_v42 = vrot.slane %v673_v41, 4 }
 0x291   :  { %v666_v43 = vadd.f32 %v665_v38, %v664_v34  ;;  %v682_v44 = vadd.f32 %v681_v39, %v680_v37 }
 0x292   :  { %v659_v46 = vadd.f32 %v658_v57, %v657_v36  ;;  %v675_v48 = vadd.f32 %v674_v42, %v673_v41 }
 0x293   :  { %v667_v49 = vrot.slane %v666_v43, 1  ;;  %v683_v50 = vrot.slane %v682_v44, 2 }
 0x294   :  { %v660_v51 = vrot.slane %v659_v46, 1  ;;  %v676_v52 = vrot.slane %v675_v48, 2 }
 0x295   :  { %v668_v53 = vadd.f32 %v667_v49, %v666_v43  ;;  %v684_v54 = vadd.f32 %v683_v50, %v682_v44 }
 0x296   :  { %v661_v40 = vadd.f32 %v660_v51, %v659_v46  ;;  %v677_v55 = vadd.f32 %v676_v52, %v675_v48 }
 0x297   :  { %v685_v56 = vrot.slane %v684_v54, 1  ;;  %v688_v58 = vmul.f32 %v668_v53, %v668_v53  ;;  %v695_v8 = vsub.f32 %v1884_v6, %v668_v53  ;;  %v696_v9 = vsub.f32 %v1888_v11, %v668_v53 }
 0x298   :  { %v678_v0 = vrot.slane %v677_v55, 1  ;;  %v687_v59 = vmul.f32 %v661_v40, %v661_v40  ;;  %v693_v12 = vsub.f32 %v1886_v7, %v661_v40  ;;  %v694_v14 = vsub.f32 %v1890_v13, %v661_v40 }
 0x299   :  { %v686_v1 = vadd.f32 %v685_v56, %v684_v54 }
 0x29a   :  { %v679_v60 = vadd.f32 %v678_v0, %v677_v55 }
 0x29b   :  { %v690_v61 = vsub.f32 %v686_v1, %v688_v58 }
 0x29c   :  { %v689_v63 = vsub.f32 %v679_v60, %v687_v59 }
 0x29d   :  { %v692_v2 = vmax.f32 %v690_v61, 0.0 }
 0x29e   :  { %v691_v3 = vmax.f32 %v689_v63, 0.0 }
 0x29f   :  { %v698_v4 = vadd.f32 1e-05, %v692_v2 }
 0x2a0   :  { %v697_v5 = vadd.f32 1e-05, %v691_v3 }
 0x2a1   :  { %1621 = vrsqrt.f32 %v698_v4 }
 0x2a2   :  { %1623 = vrsqrt.f32 %v697_v5 }
 0x2ab   :  { %v1622_v10 = vpop.eup %1621 }
 0x2ac   :  { %v1624_v17 = vpop.eup %1623  ;;  %v703_v18 = vmul.f32 %v1622_v10, %v695_v8  ;;  %v704_v19 = vmul.f32 %v1622_v10, %v696_v9  ;;  %v1593_v8 = vld [vmem:[%s2090_s9 + $0xa0] sm:$0xff]   ;;  %v1595_v9 = vld [vmem:[%s2090_s9 + $0xb0] sm:$0xff]   ;;  %v1596_v10 = vld [vmem:[%s2090_s9 + $0xb8] sm:$0xff]  }
 0x2ad   :  { %v701_v22 = vmul.f32 %v1624_v17, %v693_v12  ;;  %v702_v6 = vmul.f32 %v1624_v17, %v694_v14  ;;  %v1597_v14 = vld [vmem:[%s2091_s11] sm:$0xff]  }
 0x2ae   :  { %v713_v23 = vmul.f32 %v1288_v15, %v703_v18  ;;  %v714_v11 = vmul.f32 %v1288_v15, %v704_v19  ;;  %v1641_v18 = vld [vmem:[%s2083_s0] sm:$0xff]  ;;  %v1642_v19 = vld [vmem:[%s2083_s0 + $0x8] sm:$0xff] }
 0x2af   :  { %v711_v24 = vmul.f32 %v1288_v15, %v701_v22  ;;  %v712_v25 = vmul.f32 %v1288_v15, %v702_v6  ;;  %v1600_v6 = vld [vmem:[%s2091_s11 + $0x18] sm:$0xff]  }
 0x2b0   :  { %v723_v7 = vadd.f32 %v1289_v21, %v713_v23  ;;  %v724_v26 = vadd.f32 %v1289_v21, %v714_v11  ;;  %v1643_v23 = vld [vmem:[%s2083_s0 + $0x10] sm:$0xff]  ;;  %v1644_v11 = vld [vmem:[%s2083_s0 + $0x18] sm:$0xff] }
 0x2b1   :  { %v721_v13 = vadd.f32 %v1289_v21, %v711_v24  ;;  %v722_v27 = vadd.f32 %v1289_v21, %v712_v25  ;;  %v1139_v21 = vpack.c.bf16 %v1642_v19, %v1641_v18  ;;  %v1140_v24 = vpack.c.bf16 %v1644_v11, %v1643_v23 }
 0x2b2   :  { %v1292_v28 = vmul.f32 -1.442695, %v723_v7  ;;  %v1293_v32 = vmul.f32 -1.442695, %v724_v26 }
 0x2b3   :  { %v1290_v29 = vmul.f32 -1.442695, %v721_v13  ;;  %v1291_v30 = vmul.f32 -1.442695, %v722_v27 }
 0x2b4   :  { %1625 = vpow2.f32 %v1292_v28 }
 0x2b5   :  { %1627 = vpow2.f32 %v1290_v29 }
 0x2b6   :  { %1629 = vpow2.f32 %v1291_v30  ;;  %v1363_v30 = vld [vmem:[%s2095_s12] ss:$0 sm:$0xff] }
 0x2b7   :  { %1631 = vpow2.f32 %v1293_v32 }
 0x2be   :  { %v1626_v33 = vpop.eup %1625 }
 0x2bf   :  { %v1628_v34 = vpop.eup %1627  ;;  %v739_v35 = vadd.f32 1.0, %v1626_v33 }
 0x2c0   :  { %v1630_v36 = vpop.eup %1629  ;;  %v737_v37 = vadd.f32 1.0, %v1628_v34 }
 0x2c1   :  { %v1632_v38 = vpop.eup %1631  ;;  %v738_v39 = vadd.f32 1.0, %v1630_v36  ;;  %1633 = vrcp.f32 %v739_v35 }
 0x2c2   :  { %1635 = vrcp.f32 %v737_v37  ;;  %v740_v41 = vadd.f32 1.0, %v1632_v38 }
 0x2c3   :  { %1637 = vrcp.f32 %v738_v39 }
 0x2c4   :  { %1639 = vrcp.f32 %v740_v41 }
 0x2cb   :  { %v1634_v57 = vpop.eup %1633 }
 0x2cc   :  { %v1636_v42 = vpop.eup %1635  ;;  %v751_v43 = vmul.f32 %v1634_v57, %v723_v7 }
 0x2cd   :  { %v1638_v44 = vpop.eup %1637  ;;  %v749_v46 = vmul.f32 %v1636_v42, %v721_v13 }
 0x2ce   :  { %v1640_v48 = vpop.eup %1639  ;;  %v750_v49 = vmul.f32 %v1638_v44, %v722_v27  ;;  %v756_v50 = vrot.slane %v751_v43, 7  ;;  %v768_v54 = vrot.slane %v751_v43, 1  ;;  %v1362_v27 = vld [vmem:[%s2094_s10] ss:$0 sm:$0xff] }
 0x2cf   :  { %v752_v51 = vmul.f32 %v1640_v48, %v724_v26  ;;  %v754_v52 = vrot.slane %v749_v46, 7  ;;  %v766_v53 = vrot.slane %v749_v46, 1 }
 0x2d0   :  { %v796_v40 = vpack.c.bf16 %v750_v49, %v749_v46  ;;  %v755_v55 = vrot.slane %v750_v49, 7  ;;  %v767_v56 = vrot.slane %v750_v49, 1 }
 0x2d1   :  { %v797_v0 = vpack.c.bf16 %v752_v51, %v751_v43  ;;  %v757_v58 = vrot.slane %v752_v51, 7  ;;  %v769_v12 = vrot.slane %v752_v51, 1 }
 0x2d2   :  { %1476 = vmatprep.mubr.bf16.mxu0 %v796_v40  ;;  %v760_v1 = vsel %vm278_vm3, %v754_v52, %v755_v55  ;;  %v759_v59 = vsel %vm278_vm3, %v755_v55, %v756_v50  ;;  %v771_v63 = vsel %vm299_vm5, %v767_v56, %v768_v54  ;;  %v772_v2 = vsel %vm299_vm5, %v766_v53, %v767_v56 }
 0x2d3   :  { %1477 = vmatmul.mubr.bf16.vlgmr.msra.gmra.mrb[4].mxu0 %v797_v0  ;;  %v761_v60 = vsel %vm278_vm3, %v757_v58, %v754_v52  ;;  %v758_v61 = vsel %vm278_vm3, %v756_v50, %v757_v58  ;;  %v1357_v5 = vpack.c.bf16 %v771_v63, %v772_v2  ;;  %v770_v15 = vsel %vm299_vm5, %v768_v54, %v769_v12 }
 0x2d4   :  { %v1327_v3 = vpack.c.bf16 %v760_v1, %v761_v60  ;;  %v1330_v4 = vpack.c.bf16 %v758_v61, %v759_v59  ;;  %v773_v17 = vsel %vm299_vm5, %v769_v12, %v766_v53 }
 0x2d5   :  { %v1360_v22 = vpack.c.bf16 %v773_v17, %v770_v15 }
 0x2d6   :  { %1496 = vmatprep.mubr.msk.bf16.mxu1 %vm1326_vm10, %v1327_v3 }
 0x2d7   :  { %1497 = vmatmul.mubr.msk.bf16.vlgmr.msra.gmra.mrb[0].mxu1 %vm1329_vm11, %v1330_v4 }
 0x2d8   :  { %1501 = vmatpush3.bf16.msra.mxu1 %v1968_v16  ;;  %1516 = vmatprep.mubr.msk.bf16.mxu1 %vm1356_vm12, %v1357_v5  ;;  %v1594_v16 = vld [vmem:[%s2090_s9 + $0xa8] sm:$0xff]  }
 0x2d9   :  { %1502 = vmatprep.subr.bf16.mxu1 %v1590_v31 }
 0x2dc   :  { %1503 = vmatpush3.bf16.msra.mxu1 %v1590_v31 }
 0x2dd   :  { %1504 = vmatprep.subr.bf16.mxu1 %v1591_v45 }
 0x2e0   :  { %1505 = vmatpush3.bf16.msra.mxu1 %v1591_v45 }
 0x2e1   :  { %1506 = vmatprep.subr.bf16.mxu1 %v1592_v47 }
 0x2e4   :  { %1507 = vmatpush3.bf16.msra.mxu1 %v1592_v47 }
 0x2e5   :  { %1508 = vmatprep.subr.bf16.mxu1 %v1593_v8 }
 0x2e8   :  { %1509 = vmatpush3.bf16.msra.mxu1 %v1593_v8 }
 0x2e9   :  { %1510 = vmatprep.subr.bf16.mxu1 %v1594_v16 }
 0x2ec   :  { %1511 = vmatpush3.bf16.msra.mxu1 %v1594_v16 }
 0x2ed   :  { %1512 = vmatprep.subr.bf16.mxu1 %v1595_v9 }
 0x2f0   :  { %1513 = vmatpush3.bf16.msra.mxu1 %v1595_v9 }
 0x2f1   :  { %1514 = vmatprep.subr.bf16.mxu1 %v1596_v10 }
 0x2f4   :  { %1515 = vmatpush3.bf16.msra.mxu1 %v1596_v10 }
 0x2f5   :  { %1520 = vmatprep.subr.bf16.mxu1 %v1597_v14 }
 0x2f7   :  { %1517 = vmatmul.mubr.msk.bf16.vlgmr.msra.gmra.mrb[0].mxu1 %vm1359_vm13, %v1360_v22 }
 0x2f8   :  { %1521 = vmatpush3.bf16.msra.mxu1 %v1597_v14  ;;  %1528 = vmatprep.mubr.msk.bf16.mxu1 %vm113_vm0, %v1139_v21 }
 0x2f9   :  { %1522 = vmatprep.subr.bf16.mxu1 %v1598_v20 }
 0x2fc   :  { %1523 = vmatpush3.bf16.msra.mxu1 %v1598_v20 }
 0x2fd   :  { %1524 = vmatprep.subr.bf16.mxu1 %v1599_v62 }
 0x300   :  { %1525 = vmatpush3.bf16.msra.mxu1 %v1599_v62 }
 0x301   :  { %1526 = vmatprep.subr.bf16.mxu1 %v1600_v6 }
 0x304   :  { %1527 = vmatpush3.bf16.msra.mxu1 %v1600_v6 }
 0x307   :  { %1529 = vmatmul.mubr.msk.bf16.vlgmr.msra.gmra.mrb[0].mxu1 %vm113_vm0, %v1140_v24 }
 0x3a6   :  { %v1478_v25 = vpop.f32.mrb[4].mxu0 }
 0x3a7   :  { %v897_v7 = vpop.f32.mrb[5].mxu0  ;;  %v1532_v32 = vadd.f32 %v1478_v25, %v1362_v27 }
 0x3a8   :  { %v1479_v26 = vpop.f32.mrb[6].mxu0  ;;  %v1535_v33 = vadd.f32 %v1362_v27, %v897_v7 }
 0x3a9   :  { %v900_v13 = vpop.f32.mrb[7].mxu0  ;;  %v1538_v28 = vadd.f32 %v1479_v26, %v1362_v27 }
 0x3aa   :  { %v1541_v29 = vadd.f32 %v1362_v27, %v900_v13 }
 0x3ab   :  { %v1539_v37 = vadd.f32 %v1538_v28, %v1363_v30 }
 0x3ac   :  { %v1542_v41 = vadd.f32 %v1541_v29, %v1363_v30 }
 0x3da   :  { %v1530_v34 = vpop.f32.mrb[0].mxu1 }
 0x3db   :  { %v1533_v35 = vadd.f32 %v1532_v32, %v1530_v34  ;;  %v1220_v36 = vpop.f32.mrb[1].mxu1 }
 0x3dc   :  { %v1536_v38 = vadd.f32 %v1535_v33, %v1220_v36  ;;  %v1531_v39 = vpop.f32.mrb[2].mxu1 }
 0x3dd   :  { %v1534_v57 = vadd.f32 %v1533_v35, %v1363_v30  ;;  %v1540_v42 = vadd.f32 %v1539_v37, %v1531_v39  ;;  %v1223_v43 = vpop.f32.mrb[3].mxu1 }
 0x3de   :  { %v1537_v44 = vadd.f32 %v1536_v38, %v1363_v30  ;;  %v1543_v46 = vadd.f32 %v1542_v41, %v1223_v43 }
 0x3df   :  { %1241 = vst [vmem:[%s2096_s13 + $0x10] sm:$0xff] %v1534_v57  ;;  %1242 = vst [vmem:[%s2096_s13 + $0x18] sm:$0xff] %v1540_v42 }
 0x3e0   :  { %1239 = vst [vmem:[%s2096_s13] sm:$0xff] %v1537_v44  ;;  %1240 = vst [vmem:[%s2096_s13 + $0x8] sm:$0xff] %v1543_v46 }

</bundles_post_ra>
